<compile_context>
chip_gen: v7x
topology: tpu7x:2x2x1
jax: 0.10.0
libtpu: 0.0.40
codegen_flags: <defaults>
</compile_context>

<pallas_src>
import functools

import jax
import jax.numpy as jnp
from jax.experimental import pallas as pl
from jax.experimental.pallas import tpu as pltpu


# 48 MiB scoped VMEM: above the 16/32 MiB defaults, safely below v7x's 64 MiB.
_VMEM_LIMIT = 48 * 1024 * 1024


def _pick_tile_m(m, cap=512):
    """Row-tile for the M = B*S dimension.

    cap=512 keeps double-buffered activation tiles inside v7x's 64 MiB VMEM at
    production D/F; v5e/v6e (128 MiB) could raise this to 1024.
    """
    if m <= cap:
        return m
    for t in (512, 384, 256, 128, 64, 32, 16, 8):
        if t <= cap and m % t == 0:
            return t
    return cap  # remainder handled as a partial block


# ----------------------------- Pallas kernels ------------------------------ #

def _attn_block_kernel(x_ref, wqkv_ref, bqkv_ref, wo_ref, bo_ref, g_ref, b_ref,
                       o_ref, *, nhead, scale, compute_dtype, approx):
    """Per-batch fused block: LN1(x + OutProj(MHA(QKVProj(x))))."""
    x = x_ref[0]                                                   # (S, D) f32
    d = x.shape[-1]
    hd = d // nhead

    # Fused QKV projection (MXU, f32 accumulation).
    qkv = (jnp.dot(x.astype(compute_dtype), wqkv_ref[...],
                   preferred_element_type=jnp.float32) + bqkv_ref[...])
    qkv = qkv.astype(compute_dtype)                                # (S, 3D)

    # Multi-head attention.  Heads are a static python loop (unrolled at
    # trace time); output assembled as a lane-dense (S, D) slab.
    # TODO(synk): for long sequences, tile queries flash-style (online softmax)
    # instead of materializing the full (S, S) score matrix per head.
    outs = []
    for h in range(nhead):
        qh = qkv[:, h * hd:(h + 1) * hd]
        kh = qkv[:, d + h * hd:d + (h + 1) * hd]
        vh = qkv[:, 2 * d + h * hd:2 * d + (h + 1) * hd]
        # scale applied to the f32 scores (not to low-precision q).
        s = jnp.dot(qh, kh.T, preferred_element_type=jnp.float32) * scale
        s = s - jnp.max(s, axis=-1, keepdims=True)
        p = jnp.exp(s)
        l = jnp.sum(p, axis=-1, keepdims=True)
        p = p * pl.reciprocal(l, approx=approx)
        outs.append(jnp.dot(p.astype(compute_dtype), vh,
                            preferred_element_type=jnp.float32))
    attn = jnp.concatenate(outs, axis=-1)                          # (S, D) f32

    # Output projection + residual + LayerNorm1 (all f32).
    y = (x
         + jnp.dot(attn.astype(compute_dtype), wo_ref[...],
                   preferred_element_type=jnp.float32)
         + bo_ref[...])
    mu = jnp.mean(y, axis=-1, keepdims=True)
    var = jnp.mean((y - mu) ** 2, axis=-1, keepdims=True)
    o_ref[0] = ((y - mu) * jax.lax.rsqrt(var + 1e-5) * g_ref[...]
                + b_ref[...]).astype(o_ref.dtype)


def _ffn_res_ln_kernel(x_ref, w1_ref, b1_ref, w2_ref, b2_ref, g_ref, bb_ref,
                       o_ref, *, compute_dtype):
    # y = LayerNorm(x + relu(x @ w1 + b1) @ w2 + b2)
    # TODO(synk): for very large dim_feedforward on v7x (64 MiB VMEM), add an
    # F-reduction grid axis with an accumulator scratch instead of holding the
    # full w1/w2 slabs resident.
    x = x_ref[...]
    h = jnp.dot(x.astype(compute_dtype), w1_ref[...],
                preferred_element_type=jnp.float32) + b1_ref[...]
    h = jnp.maximum(h, 0.0)
    y = (x
         + jnp.dot(h.astype(compute_dtype), w2_ref[...],
                   preferred_element_type=jnp.float32)
         + b2_ref[...])
    mu = jnp.mean(y, axis=-1, keepdims=True)
    var = jnp.mean((y - mu) ** 2, axis=-1, keepdims=True)
    o_ref[...] = ((y - mu) * jax.lax.rsqrt(var + 1e-5) * g_ref[...]
                  + bb_ref[...]).astype(o_ref.dtype)


# ------------------------------ wrappers ----------------------------------- #

def _attention_block_pallas(x_b, prep, nhead, scale, compute_dtype, approx):
    """Grid over batch; weights pinned in VMEM with constant index_maps."""
    b, s, d = x_b.shape
    pinned = [prep["wqkv_t"], prep["bqkv"], prep["wo_t"], prep["bo"],
              prep["ln1_g"], prep["ln1_b"]]
    in_specs = [pl.BlockSpec((1, s, d), lambda i: (i, 0, 0))]
    in_specs += [pl.BlockSpec(a.shape, lambda i: (0, 0)) for a in pinned]
    return pl.pallas_call(
        functools.partial(_attn_block_kernel, nhead=nhead, scale=scale,
                          compute_dtype=compute_dtype, approx=approx),
        out_shape=jax.ShapeDtypeStruct((b, s, d), jnp.float32),
        grid=(b,),
        in_specs=in_specs,
        out_specs=pl.BlockSpec((1, s, d), lambda i: (i, 0, 0)),
        compiler_params=pltpu.CompilerParams(
            dimension_semantics=("parallel",),
            vmem_limit_bytes=_VMEM_LIMIT),
    )(x_b, *pinned)


def _row_tiled_call(kernel, row_args, pinned_args, out_cols, out_dtype, tile_m):
    """pallas_call gridded over row tiles of the M (=B*S) dimension.

    row_args:    (M, cols) arrays, blocked (tile_m, cols) along the grid.
    pinned_args: weights / biases / LN params, whole-array blocks with a
                 constant index_map (single DMA, resident in VMEM across steps).
    """
    m = row_args[0].shape[0]
    grid = (pl.cdiv(m, tile_m),)
    in_specs = [pl.BlockSpec((tile_m, a.shape[1]), lambda i: (i, 0))
                for a in row_args]
    in_specs += [pl.BlockSpec(a.shape, lambda i: (0, 0)) for a in pinned_args]
    return pl.pallas_call(
        kernel,
        out_shape=jax.ShapeDtypeStruct((m, out_cols), out_dtype),
        grid=grid,
        in_specs=in_specs,
        out_specs=pl.BlockSpec((tile_m, out_cols), lambda i: (i, 0)),
        compiler_params=pltpu.CompilerParams(
            dimension_semantics=("parallel",),
            vmem_limit_bytes=_VMEM_LIMIT),
    )(*row_args, *pinned_args)


def prepare_params(p, compute_dtype=jnp.float32):
    """One-time weight prep: hoisted transposes, bias reshapes, dtype cast."""
    cd = compute_dtype
    f32 = jnp.float32
    return {
        "wqkv_t": jnp.asarray(p["in_proj_w"].T, cd),      # (D, 3D)
        "bqkv":   jnp.asarray(p["in_proj_b"], f32).reshape(1, -1),
        "wo_t":   jnp.asarray(p["out_proj_w"].T, cd),     # (D, D)
        "bo":     jnp.asarray(p["out_proj_b"], f32).reshape(1, -1),
        "w1_t":   jnp.asarray(p["w1"].T, cd),             # (D, F)
        "b1":     jnp.asarray(p["b1"], f32).reshape(1, -1),
        "w2_t":   jnp.asarray(p["w2"].T, cd),             # (F, D)
        "b2":     jnp.asarray(p["b2"], f32).reshape(1, -1),
        "ln1_g":  jnp.asarray(p["ln1_g"], f32).reshape(1, -1),
        "ln1_b":  jnp.asarray(p["ln1_b"], f32).reshape(1, -1),
        "ln2_g":  jnp.asarray(p["ln2_g"], f32).reshape(1, -1),
        "ln2_b":  jnp.asarray(p["ln2_b"], f32).reshape(1, -1),
    }


@functools.partial(jax.jit,
                   static_argnames=("nhead", "compute_dtype", "tile_m"))
def transformer_encoder_layer(src, prep, *, nhead,
                              compute_dtype=jnp.float32, tile_m=None):
    """forward_post with src_mask=None, key_padding_mask=None, pos=None."""
    s_len, b_sz, d = src.shape
    hd = d // nhead
    m = s_len * b_sz
    if tile_m is None:
        tile_m = _pick_tile_m(m)
    approx = compute_dtype != jnp.float32   # exact softmax recip on f32 path

    # batch-major so attention consumes contiguous (S, D) blocks; all
    # following reshapes are metadata-only.
    x_b = jnp.transpose(src, (1, 0, 2)).astype(jnp.float32)   # (B, S, D)

    # ---- fused QKV proj + MHA + out-proj + residual + LayerNorm1 ------------
    y1 = _attention_block_pallas(x_b, prep, nhead, 1.0 / (hd ** 0.5),
                                 compute_dtype, approx)       # (B, S, D) f32

    # ---- FFN (relu) + residual + LayerNorm2 (row-tiled over M) --------------
    y2 = _row_tiled_call(
        functools.partial(_ffn_res_ln_kernel, compute_dtype=compute_dtype),
        row_args=[y1.reshape(m, d)],
        pinned_args=[prep["w1_t"], prep["b1"], prep["w2_t"], prep["b2"],
                     prep["ln2_g"], prep["ln2_b"]],
        out_cols=d, out_dtype=jnp.float32, tile_m=tile_m)

    return jnp.transpose(y2.reshape(b_sz, s_len, d), (1, 0, 2))


# --------------------------- pure-JAX reference ----------------------------- #

def reference(src, p, nhead):
    S, B, D = src.shape
    hd = D // nhead
    x = src.reshape(S * B, D)
    qkv = x @ p["in_proj_w"].T + p["in_proj_b"]
    q, k, v = jnp.split(qkv, 3, axis=-1)

    def heads(t):
        return t.reshape(S, B, nhead, hd).transpose(1, 2, 0, 3)

    qh, kh, vh = heads(q), heads(k), heads(v)
    s = (qh * (hd ** -0.5)) @ kh.transpose(0, 1, 3, 2)
    a = jax.nn.softmax(s, axis=-1) @ vh
    a = a.transpose(2, 0, 1, 3).reshape(S * B, D)
    y = x + a @ p["out_proj_w"].T + p["out_proj_b"]

    def ln(t, g, b):
        mu = t.mean(-1, keepdims=True)
        var = ((t - mu) ** 2).mean(-1, keepdims=True)
        return (t - mu) / jnp.sqrt(var + 1e-5) * g + b

    y = ln(y, p["ln1_g"], p["ln1_b"])
    h = jnp.maximum(y @ p["w1"].T + p["b1"], 0.0)
    z = ln(y + h @ p["w2"].T + p["b2"], p["ln2_g"], p["ln2_b"])
    return z.reshape(S, B, D)


# --------------------------------- main ------------------------------------- #

if __name__ == "__main__":
    S, B, D, NHEAD, FFN = 8, 2, 32, 4, 64

    key = jax.random.PRNGKey(0)
    keys = jax.random.split(key, 10)
    scale = 0.1
    params = {
        "in_proj_w": scale * jax.random.normal(keys[0], (3 * D, D), jnp.float32),
        "in_proj_b": scale * jax.random.normal(keys[1], (3 * D,), jnp.float32),
        "out_proj_w": scale * jax.random.normal(keys[2], (D, D), jnp.float32),
        "out_proj_b": scale * jax.random.normal(keys[3], (D,), jnp.float32),
        "w1": scale * jax.random.normal(keys[4], (FFN, D), jnp.float32),
        "b1": scale * jax.random.normal(keys[5], (FFN,), jnp.float32),
        "w2": scale * jax.random.normal(keys[6], (D, FFN), jnp.float32),
        "b2": scale * jax.random.normal(keys[7], (D,), jnp.float32),
        "ln1_g": jnp.ones((D,), jnp.float32),
        "ln1_b": jnp.zeros((D,), jnp.float32),
        "ln2_g": jnp.ones((D,), jnp.float32),
        "ln2_b": jnp.zeros((D,), jnp.float32),
    }

    src = jax.random.normal(keys[8], (S, B, D), jnp.float32)
    ref = reference(src, params, NHEAD)

    # ---- f32 path: exact check against the pure-JAX reference --------------
    prep32 = prepare_params(params, jnp.float32)
    out = transformer_encoder_layer(src, prep32, nhead=NHEAD,
                                    compute_dtype=jnp.float32)
    out = jax.block_until_ready(out)
    assert out.shape == (S, B, D)
    assert jnp.allclose(out, ref, atol=1e-4, rtol=1e-4), (
        float(jnp.max(jnp.abs(out - ref))))

    # ---- bf16-MXU fast path (v6e/v7x): bf16 matmul inputs, f32 accumulate,
    # f32 softmax/LayerNorm.  Looser tolerance for reduced matmul precision.
    prep16 = prepare_params(params, jnp.bfloat16)
    out16 = transformer_encoder_layer(src, prep16, nhead=NHEAD,
                                      compute_dtype=jnp.bfloat16)
    out16 = jax.block_until_ready(out16)
    assert out16.shape == (S, B, D)
    assert jnp.allclose(out16, ref, atol=5e-2, rtol=5e-2), (
        float(jnp.max(jnp.abs(out16 - ref))))

    print("KERNEL_OK")
</pallas_src>

<mosaic_0001>
module attributes {stable_mosaic.version = 11 : i64} {
  func.func @_ffn_res_ln_kernel(%arg0: i32, %arg1: memref<16x32xf32, #tpu.memory_space<vmem>>, %arg2: memref<32x64xf32, #tpu.memory_space<vmem>>, %arg3: memref<1x64xf32, #tpu.memory_space<vmem>>, %arg4: memref<64x32xf32, #tpu.memory_space<vmem>>, %arg5: memref<1x32xf32, #tpu.memory_space<vmem>>, %arg6: memref<1x32xf32, #tpu.memory_space<vmem>>, %arg7: memref<1x32xf32, #tpu.memory_space<vmem>>, %arg8: memref<16x32xf32, #tpu.memory_space<vmem>>) attributes {dimension_semantics = [#tpu.dimension_semantics<parallel>], iteration_bounds = array<i64: 1>, scalar_prefetch = 0 : i64, scratch_operands = 0 : i64, tpu.core_type = #tpu.core_type<tc>, window_params = [{transform_indices = @transform_0, window_bounds = array<i64: 16, 32>}, {pipeline_mode = #tpu.pipeline_mode<synchronous>, transform_indices = @transform_1, window_bounds = array<i64: 32, 64>}, {pipeline_mode = #tpu.pipeline_mode<synchronous>, transform_indices = @transform_2, window_bounds = array<i64: 1, 64>}, {pipeline_mode = #tpu.pipeline_mode<synchronous>, transform_indices = @transform_3, window_bounds = array<i64: 64, 32>}, {pipeline_mode = #tpu.pipeline_mode<synchronous>, transform_indices = @transform_4, window_bounds = array<i64: 1, 32>}, {pipeline_mode = #tpu.pipeline_mode<synchronous>, transform_indices = @transform_5, window_bounds = array<i64: 1, 32>}, {pipeline_mode = #tpu.pipeline_mode<synchronous>, transform_indices = @transform_6, window_bounds = array<i64: 1, 32>}, {transform_indices = @transform_7, window_bounds = array<i64: 16, 32>}]} {
    %c0 = arith.constant 0 : index
    %c0_0 = arith.constant 0 : index
    %0 = vector.load %arg1[%c0, %c0_0] : memref<16x32xf32, #tpu.memory_space<vmem>>, vector<16x32xf32>
    %c0_1 = arith.constant 0 : index
    %c0_2 = arith.constant 0 : index
    %1 = vector.load %arg2[%c0_1, %c0_2] : memref<32x64xf32, #tpu.memory_space<vmem>>, vector<32x64xf32>
    %cst = arith.constant dense<0.000000e+00> : vector<16x64xf32>
    %2 = tpu.matmul %0, %1, %cst {dimension_numbers = #tpu.dot_dimension_numbers<[1], [0], [0], [1], [0, 0, 1, 1], [], []>} : vector<16x32xf32>, vector<32x64xf32>, vector<16x64xf32> -> vector<16x64xf32>
    %c0_3 = arith.constant 0 : index
    %c0_4 = arith.constant 0 : index
    %3 = vector.load %arg3[%c0_3, %c0_4] : memref<1x64xf32, #tpu.memory_space<vmem>>, vector<1x64xf32>
    %4 = vector.broadcast %3 : vector<1x64xf32> to vector<16x64xf32>
    %5 = arith.addf %2, %4 : vector<16x64xf32>
    %cst_5 = arith.constant 0.000000e+00 : f32
    %6 = vector.broadcast %cst_5 : f32 to vector<16x64xf32>
    %7 = arith.maximumf %5, %6 : vector<16x64xf32>
    %c0_6 = arith.constant 0 : index
    %c0_7 = arith.constant 0 : index
    %8 = vector.load %arg4[%c0_6, %c0_7] : memref<64x32xf32, #tpu.memory_space<vmem>>, vector<64x32xf32>
    %cst_8 = arith.constant dense<0.000000e+00> : vector<16x32xf32>
    %9 = tpu.matmul %7, %8, %cst_8 {dimension_numbers = #tpu.dot_dimension_numbers<[1], [0], [0], [1], [0, 0, 1, 1], [], []>} : vector<16x64xf32>, vector<64x32xf32>, vector<16x32xf32> -> vector<16x32xf32>
    %10 = arith.addf %0, %9 : vector<16x32xf32>
    %c0_9 = arith.constant 0 : index
    %c0_10 = arith.constant 0 : index
    %11 = vector.load %arg5[%c0_9, %c0_10] : memref<1x32xf32, #tpu.memory_space<vmem>>, vector<1x32xf32>
    %12 = vector.broadcast %11 : vector<1x32xf32> to vector<16x32xf32>
    %13 = arith.addf %10, %12 : vector<16x32xf32>
    %cst_11 = arith.constant dense<0.000000e+00> : vector<16xf32>
    %14 = vector.multi_reduction <add>, %13, %cst_11 [1] : vector<16x32xf32> to vector<16xf32>
    %15 = vector.shape_cast %14 : vector<16xf32> to vector<16x1xf32>
    %cst_12 = arith.constant 3.200000e+01 : f32
    %16 = vector.broadcast %cst_12 : f32 to vector<16x1xf32>
    %17 = arith.divf %15, %16 : vector<16x1xf32>
    %18 = vector.broadcast %17 : vector<16x1xf32> to vector<16x32xf32>
    %19 = arith.subf %13, %18 : vector<16x32xf32>
    %20 = arith.mulf %19, %19 : vector<16x32xf32>
    %cst_13 = arith.constant dense<0.000000e+00> : vector<16xf32>
    %21 = vector.multi_reduction <add>, %20, %cst_13 [1] : vector<16x32xf32> to vector<16xf32>
    %22 = vector.shape_cast %21 : vector<16xf32> to vector<16x1xf32>
    %cst_14 = arith.constant 3.200000e+01 : f32
    %23 = vector.broadcast %cst_14 : f32 to vector<16x1xf32>
    %24 = arith.divf %22, %23 : vector<16x1xf32>
    %25 = vector.broadcast %17 : vector<16x1xf32> to vector<16x32xf32>
    %26 = arith.subf %13, %25 : vector<16x32xf32>
    %cst_15 = arith.constant 9.99999974E-6 : f32
    %27 = vector.broadcast %cst_15 : f32 to vector<16x1xf32>
    %28 = arith.addf %24, %27 : vector<16x1xf32>
    %29 = math.rsqrt %28 : vector<16x1xf32>
    %30 = vector.broadcast %29 : vector<16x1xf32> to vector<16x32xf32>
    %31 = arith.mulf %26, %30 : vector<16x32xf32>
    %c0_16 = arith.constant 0 : index
    %c0_17 = arith.constant 0 : index
    %32 = vector.load %arg6[%c0_16, %c0_17] : memref<1x32xf32, #tpu.memory_space<vmem>>, vector<1x32xf32>
    %33 = vector.broadcast %32 : vector<1x32xf32> to vector<16x32xf32>
    %34 = arith.mulf %31, %33 : vector<16x32xf32>
    %c0_18 = arith.constant 0 : index
    %c0_19 = arith.constant 0 : index
    %35 = vector.load %arg7[%c0_18, %c0_19] : memref<1x32xf32, #tpu.memory_space<vmem>>, vector<1x32xf32>
    %36 = vector.broadcast %35 : vector<1x32xf32> to vector<16x32xf32>
    %37 = arith.addf %34, %36 : vector<16x32xf32>
    %c0_20 = arith.constant 0 : index
    %c0_21 = arith.constant 0 : index
    %38 = vector.load %arg8[%c0_20, %c0_21] : memref<16x32xf32, #tpu.memory_space<vmem>>, vector<16x32xf32>
    tpu.vector_store %arg8[%c0_20, %c0_21], %37 {strides = array<i32>} : memref<16x32xf32, #tpu.memory_space<vmem>>, vector<16x32xf32>,
    return
  }
  func.func @transform_0(%arg0: i32) -> (i32, i32) {
    %c0_i32 = arith.constant 0 : i32
    %c0_i32_0 = arith.constant 0 : i32
    return %arg0, %c0_i32 : i32, i32
  }
  func.func @transform_1(%arg0: i32) -> (i32, i32) {
    %c0_i32 = arith.constant 0 : i32
    %c0_i32_0 = arith.constant 0 : i32
    %c0_i32_1 = arith.constant 0 : i32
    return %c0_i32, %c0_i32_0 : i32, i32
  }
  func.func @transform_2(%arg0: i32) -> (i32, i32) {
    %c0_i32 = arith.constant 0 : i32
    %c0_i32_0 = arith.constant 0 : i32
    %c0_i32_1 = arith.constant 0 : i32
    return %c0_i32, %c0_i32_0 : i32, i32
  }
  func.func @transform_3(%arg0: i32) -> (i32, i32) {
    %c0_i32 = arith.constant 0 : i32
    %c0_i32_0 = arith.constant 0 : i32
    %c0_i32_1 = arith.constant 0 : i32
    return %c0_i32, %c0_i32_0 : i32, i32
  }
  func.func @transform_4(%arg0: i32) -> (i32, i32) {
    %c0_i32 = arith.constant 0 : i32
    %c0_i32_0 = arith.constant 0 : i32
    %c0_i32_1 = arith.constant 0 : i32
    return %c0_i32, %c0_i32_0 : i32, i32
  }
  func.func @transform_5(%arg0: i32) -> (i32, i32) {
    %c0_i32 = arith.constant 0 : i32
    %c0_i32_0 = arith.constant 0 : i32
    %c0_i32_1 = arith.constant 0 : i32
    return %c0_i32, %c0_i32_0 : i32, i32
  }
  func.func @transform_6(%arg0: i32) -> (i32, i32) {
    %c0_i32 = arith.constant 0 : i32
    %c0_i32_0 = arith.constant 0 : i32
    %c0_i32_1 = arith.constant 0 : i32
    return %c0_i32, %c0_i32_0 : i32, i32
  }
  func.func @transform_7(%arg0: i32) -> (i32, i32) {
    %c0_i32 = arith.constant 0 : i32
    %c0_i32_0 = arith.constant 0 : i32
    return %arg0, %c0_i32 : i32, i32
  }
}

module attributes {stable_mosaic.version = 11 : i64} {
  func.func @_attn_block_kernel(%arg0: i32, %arg1: memref<1x8x32xf32, #tpu.memory_space<vmem>>, %arg2: memref<32x96xf32, #tpu.memory_space<vmem>>, %arg3: memref<1x96xf32, #tpu.memory_space<vmem>>, %arg4: memref<32x32xf32, #tpu.memory_space<vmem>>, %arg5: memref<1x32xf32, #tpu.memory_space<vmem>>, %arg6: memref<1x32xf32, #tpu.memory_space<vmem>>, %arg7: memref<1x32xf32, #tpu.memory_space<vmem>>, %arg8: memref<1x8x32xf32, #tpu.memory_space<vmem>>) attributes {dimension_semantics = [#tpu.dimension_semantics<parallel>], iteration_bounds = array<i64: 2>, scalar_prefetch = 0 : i64, scratch_operands = 0 : i64, tpu.core_type = #tpu.core_type<tc>, window_params = [{transform_indices = @transform_0, window_bounds = array<i64: 1, 8, 32>}, {pipeline_mode = #tpu.pipeline_mode<synchronous>, transform_indices = @transform_1, window_bounds = array<i64: 32, 96>}, {pipeline_mode = #tpu.pipeline_mode<synchronous>, transform_indices = @transform_2, window_bounds = array<i64: 1, 96>}, {pipeline_mode = #tpu.pipeline_mode<synchronous>, transform_indices = @transform_3, window_bounds = array<i64: 32, 32>}, {pipeline_mode = #tpu.pipeline_mode<synchronous>, transform_indices = @transform_4, window_bounds = array<i64: 1, 32>}, {pipeline_mode = #tpu.pipeline_mode<synchronous>, transform_indices = @transform_5, window_bounds = array<i64: 1, 32>}, {pipeline_mode = #tpu.pipeline_mode<synchronous>, transform_indices = @transform_6, window_bounds = array<i64: 1, 32>}, {transform_indices = @transform_7, window_bounds = array<i64: 1, 8, 32>}]} {
    %c0 = arith.constant 0 : index
    %c0_0 = arith.constant 0 : index
    %c0_1 = arith.constant 0 : index
    %0 = vector.load %arg1[%c0, %c0_0, %c0_1] : memref<1x8x32xf32, #tpu.memory_space<vmem>>, vector<1x8x32xf32>
    %1 = vector.shape_cast %0 : vector<1x8x32xf32> to vector<8x32xf32>
    %c0_2 = arith.constant 0 : index
    %c0_3 = arith.constant 0 : index
    %2 = vector.load %arg2[%c0_2, %c0_3] : memref<32x96xf32, #tpu.memory_space<vmem>>, vector<32x96xf32>
    %cst = arith.constant dense<0.000000e+00> : vector<8x96xf32>
    %3 = tpu.matmul %1, %2, %cst {dimension_numbers = #tpu.dot_dimension_numbers<[1], [0], [0], [1], [0, 0, 1, 1], [], []>} : vector<8x32xf32>, vector<32x96xf32>, vector<8x96xf32> -> vector<8x96xf32>
    %c0_4 = arith.constant 0 : index
    %c0_5 = arith.constant 0 : index
    %4 = vector.load %arg3[%c0_4, %c0_5] : memref<1x96xf32, #tpu.memory_space<vmem>>, vector<1x96xf32>
    %5 = vector.broadcast %4 : vector<1x96xf32> to vector<8x96xf32>
    %6 = arith.addf %3, %5 : vector<8x96xf32>
    %7 = vector.extract_strided_slice %6 {offsets = [0, 0], sizes = [8, 8], strides = [1, 1]} : vector<8x96xf32> to vector<8x8xf32>
    %8 = vector.extract_strided_slice %6 {offsets = [0, 32], sizes = [8, 8], strides = [1, 1]} : vector<8x96xf32> to vector<8x8xf32>
    %9 = vector.extract_strided_slice %6 {offsets = [0, 64], sizes = [8, 8], strides = [1, 1]} : vector<8x96xf32> to vector<8x8xf32>
    %10 = tpu.transpose %8, [1, 0] : vector<8x8xf32> -> vector<8x8xf32>
    %cst_6 = arith.constant dense<0.000000e+00> : vector<8x8xf32>
    %11 = tpu.matmul %7, %10, %cst_6 {dimension_numbers = #tpu.dot_dimension_numbers<[1], [0], [0], [1], [0, 0, 1, 1], [], []>} : vector<8x8xf32>, vector<8x8xf32>, vector<8x8xf32> -> vector<8x8xf32>
    %cst_7 = arith.constant 0.353553385 : f32
    %12 = vector.broadcast %cst_7 : f32 to vector<8x8xf32>
    %13 = arith.mulf %11, %12 : vector<8x8xf32>
    %cst_8 = arith.constant dense<0xFF800000> : vector<8xf32>
    %14 = vector.multi_reduction <maximumf>, %13, %cst_8 [1] : vector<8x8xf32> to vector<8xf32>
    %15 = vector.shape_cast %14 : vector<8xf32> to vector<8x1xf32>
    %16 = vector.broadcast %15 : vector<8x1xf32> to vector<8x8xf32>
    %17 = arith.subf %13, %16 : vector<8x8xf32>
    %18 = math.exp %17 : vector<8x8xf32>
    %cst_9 = arith.constant dense<0.000000e+00> : vector<8xf32>
    %19 = vector.multi_reduction <add>, %18, %cst_9 [1] : vector<8x8xf32> to vector<8xf32>
    %20 = vector.shape_cast %19 : vector<8xf32> to vector<8x1xf32>
    %21 = tpu.reciprocal %20 : vector<8x1xf32> -> vector<8x1xf32>
    %22 = vector.broadcast %21 : vector<8x1xf32> to vector<8x8xf32>
    %23 = arith.mulf %18, %22 : vector<8x8xf32>
    %cst_10 = arith.constant dense<0.000000e+00> : vector<8x8xf32>
    %24 = tpu.matmul %23, %9, %cst_10 {dimension_numbers = #tpu.dot_dimension_numbers<[1], [0], [0], [1], [0, 0, 1, 1], [], []>} : vector<8x8xf32>, vector<8x8xf32>, vector<8x8xf32> -> vector<8x8xf32>
    %25 = vector.extract_strided_slice %6 {offsets = [0, 8], sizes = [8, 8], strides = [1, 1]} : vector<8x96xf32> to vector<8x8xf32>
    %26 = vector.extract_strided_slice %6 {offsets = [0, 40], sizes = [8, 8], strides = [1, 1]} : vector<8x96xf32> to vector<8x8xf32>
    %27 = vector.extract_strided_slice %6 {offsets = [0, 72], sizes = [8, 8], strides = [1, 1]} : vector<8x96xf32> to vector<8x8xf32>
    %28 = tpu.transpose %26, [1, 0] : vector<8x8xf32> -> vector<8x8xf32>
    %cst_11 = arith.constant dense<0.000000e+00> : vector<8x8xf32>
    %29 = tpu.matmul %25, %28, %cst_11 {dimension_numbers = #tpu.dot_dimension_numbers<[1], [0], [0], [1], [0, 0, 1, 1], [], []>} : vector<8x8xf32>, vector<8x8xf32>, vector<8x8xf32> -> vector<8x8xf32>
    %cst_12 = arith.constant 0.353553385 : f32
    %30 = vector.broadcast %cst_12 : f32 to vector<8x8xf32>
    %31 = arith.mulf %29, %30 : vector<8x8xf32>
    %cst_13 = arith.constant dense<0xFF800000> : vector<8xf32>
    %32 = vector.multi_reduction <maximumf>, %31, %cst_13 [1] : vector<8x8xf32> to vector<8xf32>
    %33 = vector.shape_cast %32 : vector<8xf32> to vector<8x1xf32>
    %34 = vector.broadcast %33 : vector<8x1xf32> to vector<8x8xf32>
    %35 = arith.subf %31, %34 : vector<8x8xf32>
    %36 = math.exp %35 : vector<8x8xf32>
    %cst_14 = arith.constant dense<0.000000e+00> : vector<8xf32>
    %37 = vector.multi_reduction <add>, %36, %cst_14 [1] : vector<8x8xf32> to vector<8xf32>
    %38 = vector.shape_cast %37 : vector<8xf32> to vector<8x1xf32>
    %39 = tpu.reciprocal %38 : vector<8x1xf32> -> vector<8x1xf32>
    %40 = vector.broadcast %39 : vector<8x1xf32> to vector<8x8xf32>
    %41 = arith.mulf %36, %40 : vector<8x8xf32>
    %cst_15 = arith.constant dense<0.000000e+00> : vector<8x8xf32>
    %42 = tpu.matmul %41, %27, %cst_15 {dimension_numbers = #tpu.dot_dimension_numbers<[1], [0], [0], [1], [0, 0, 1, 1], [], []>} : vector<8x8xf32>, vector<8x8xf32>, vector<8x8xf32> -> vector<8x8xf32>
    %43 = vector.extract_strided_slice %6 {offsets = [0, 16], sizes = [8, 8], strides = [1, 1]} : vector<8x96xf32> to vector<8x8xf32>
    %44 = vector.extract_strided_slice %6 {offsets = [0, 48], sizes = [8, 8], strides = [1, 1]} : vector<8x96xf32> to vector<8x8xf32>
    %45 = vector.extract_strided_slice %6 {offsets = [0, 80], sizes = [8, 8], strides = [1, 1]} : vector<8x96xf32> to vector<8x8xf32>
    %46 = tpu.transpose %44, [1, 0] : vector<8x8xf32> -> vector<8x8xf32>
    %cst_16 = arith.constant dense<0.000000e+00> : vector<8x8xf32>
    %47 = tpu.matmul %43, %46, %cst_16 {dimension_numbers = #tpu.dot_dimension_numbers<[1], [0], [0], [1], [0, 0, 1, 1], [], []>} : vector<8x8xf32>, vector<8x8xf32>, vector<8x8xf32> -> vector<8x8xf32>
    %cst_17 = arith.constant 0.353553385 : f32
    %48 = vector.broadcast %cst_17 : f32 to vector<8x8xf32>
    %49 = arith.mulf %47, %48 : vector<8x8xf32>
    %cst_18 = arith.constant dense<0xFF800000> : vector<8xf32>
    %50 = vector.multi_reduction <maximumf>, %49, %cst_18 [1] : vector<8x8xf32> to vector<8xf32>
    %51 = vector.shape_cast %50 : vector<8xf32> to vector<8x1xf32>
    %52 = vector.broadcast %51 : vector<8x1xf32> to vector<8x8xf32>
    %53 = arith.subf %49, %52 : vector<8x8xf32>
    %54 = math.exp %53 : vector<8x8xf32>
    %cst_19 = arith.constant dense<0.000000e+00> : vector<8xf32>
    %55 = vector.multi_reduction <add>, %54, %cst_19 [1] : vector<8x8xf32> to vector<8xf32>
    %56 = vector.shape_cast %55 : vector<8xf32> to vector<8x1xf32>
    %57 = tpu.reciprocal %56 : vector<8x1xf32> -> vector<8x1xf32>
    %58 = vector.broadcast %57 : vector<8x1xf32> to vector<8x8xf32>
    %59 = arith.mulf %54, %58 : vector<8x8xf32>
    %cst_20 = arith.constant dense<0.000000e+00> : vector<8x8xf32>
    %60 = tpu.matmul %59, %45, %cst_20 {dimension_numbers = #tpu.dot_dimension_numbers<[1], [0], [0], [1], [0, 0, 1, 1], [], []>} : vector<8x8xf32>, vector<8x8xf32>, vector<8x8xf32> -> vector<8x8xf32>
    %61 = vector.extract_strided_slice %6 {offsets = [0, 24], sizes = [8, 8], strides = [1, 1]} : vector<8x96xf32> to vector<8x8xf32>
    %62 = vector.extract_strided_slice %6 {offsets = [0, 56], sizes = [8, 8], strides = [1, 1]} : vector<8x96xf32> to vector<8x8xf32>
    %63 = vector.extract_strided_slice %6 {offsets = [0, 88], sizes = [8, 8], strides = [1, 1]} : vector<8x96xf32> to vector<8x8xf32>
    %64 = tpu.transpose %62, [1, 0] : vector<8x8xf32> -> vector<8x8xf32>
    %cst_21 = arith.constant dense<0.000000e+00> : vector<8x8xf32>
    %65 = tpu.matmul %61, %64, %cst_21 {dimension_numbers = #tpu.dot_dimension_numbers<[1], [0], [0], [1], [0, 0, 1, 1], [], []>} : vector<8x8xf32>, vector<8x8xf32>, vector<8x8xf32> -> vector<8x8xf32>
    %cst_22 = arith.constant 0.353553385 : f32
    %66 = vector.broadcast %cst_22 : f32 to vector<8x8xf32>
    %67 = arith.mulf %65, %66 : vector<8x8xf32>
    %cst_23 = arith.constant dense<0xFF800000> : vector<8xf32>
    %68 = vector.multi_reduction <maximumf>, %67, %cst_23 [1] : vector<8x8xf32> to vector<8xf32>
    %69 = vector.shape_cast %68 : vector<8xf32> to vector<8x1xf32>
    %70 = vector.broadcast %69 : vector<8x1xf32> to vector<8x8xf32>
    %71 = arith.subf %67, %70 : vector<8x8xf32>
    %72 = math.exp %71 : vector<8x8xf32>
    %cst_24 = arith.constant dense<0.000000e+00> : vector<8xf32>
    %73 = vector.multi_reduction <add>, %72, %cst_24 [1] : vector<8x8xf32> to vector<8xf32>
    %74 = vector.shape_cast %73 : vector<8xf32> to vector<8x1xf32>
    %75 = tpu.reciprocal %74 : vector<8x1xf32> -> vector<8x1xf32>
    %76 = vector.broadcast %75 : vector<8x1xf32> to vector<8x8xf32>
    %77 = arith.mulf %72, %76 : vector<8x8xf32>
    %cst_25 = arith.constant dense<0.000000e+00> : vector<8x8xf32>
    %78 = tpu.matmul %77, %63, %cst_25 {dimension_numbers = #tpu.dot_dimension_numbers<[1], [0], [0], [1], [0, 0, 1, 1], [], []>} : vector<8x8xf32>, vector<8x8xf32>, vector<8x8xf32> -> vector<8x8xf32>
    %79 = tpu.concatenate %24, %42, %60, %78 in 1 : vector<8x8xf32>, vector<8x8xf32>, vector<8x8xf32>, vector<8x8xf32> -> vector<8x32xf32>
    %c0_26 = arith.constant 0 : index
    %c0_27 = arith.constant 0 : index
    %80 = vector.load %arg4[%c0_26, %c0_27] : memref<32x32xf32, #tpu.memory_space<vmem>>, vector<32x32xf32>
    %cst_28 = arith.constant dense<0.000000e+00> : vector<8x32xf32>
    %81 = tpu.matmul %79, %80, %cst_28 {dimension_numbers = #tpu.dot_dimension_numbers<[1], [0], [0], [1], [0, 0, 1, 1], [], []>} : vector<8x32xf32>, vector<32x32xf32>, vector<8x32xf32> -> vector<8x32xf32>
    %82 = arith.addf %1, %81 : vector<8x32xf32>
    %c0_29 = arith.constant 0 : index
    %c0_30 = arith.constant 0 : index
    %83 = vector.load %arg5[%c0_29, %c0_30] : memref<1x32xf32, #tpu.memory_space<vmem>>, vector<1x32xf32>
    %84 = vector.broadcast %83 : vector<1x32xf32> to vector<8x32xf32>
    %85 = arith.addf %82, %84 : vector<8x32xf32>
    %cst_31 = arith.constant dense<0.000000e+00> : vector<8xf32>
    %86 = vector.multi_reduction <add>, %85, %cst_31 [1] : vector<8x32xf32> to vector<8xf32>
    %87 = vector.shape_cast %86 : vector<8xf32> to vector<8x1xf32>
    %cst_32 = arith.constant 3.200000e+01 : f32
    %88 = vector.broadcast %cst_32 : f32 to vector<8x1xf32>
    %89 = arith.divf %87, %88 : vector<8x1xf32>
    %90 = vector.broadcast %89 : vector<8x1xf32> to vector<8x32xf32>
    %91 = arith.subf %85, %90 : vector<8x32xf32>
    %92 = arith.mulf %91, %91 : vector<8x32xf32>
    %cst_33 = arith.constant dense<0.000000e+00> : vector<8xf32>
    %93 = vector.multi_reduction <add>, %92, %cst_33 [1] : vector<8x32xf32> to vector<8xf32>
    %94 = vector.shape_cast %93 : vector<8xf32> to vector<8x1xf32>
    %cst_34 = arith.constant 3.200000e+01 : f32
    %95 = vector.broadcast %cst_34 : f32 to vector<8x1xf32>
    %96 = arith.divf %94, %95 : vector<8x1xf32>
    %97 = vector.broadcast %89 : vector<8x1xf32> to vector<8x32xf32>
    %98 = arith.subf %85, %97 : vector<8x32xf32>
    %cst_35 = arith.constant 9.99999974E-6 : f32
    %99 = vector.broadcast %cst_35 : f32 to vector<8x1xf32>
    %100 = arith.addf %96, %99 : vector<8x1xf32>
    %101 = math.rsqrt %100 : vector<8x1xf32>
    %102 = vector.broadcast %101 : vector<8x1xf32> to vector<8x32xf32>
    %103 = arith.mulf %98, %102 : vector<8x32xf32>
    %c0_36 = arith.constant 0 : index
    %c0_37 = arith.constant 0 : index
    %104 = vector.load %arg6[%c0_36, %c0_37] : memref<1x32xf32, #tpu.memory_space<vmem>>, vector<1x32xf32>
    %105 = vector.broadcast %104 : vector<1x32xf32> to vector<8x32xf32>
    %106 = arith.mulf %103, %105 : vector<8x32xf32>
    %c0_38 = arith.constant 0 : index
    %c0_39 = arith.constant 0 : index
    %107 = vector.load %arg7[%c0_38, %c0_39] : memref<1x32xf32, #tpu.memory_space<vmem>>, vector<1x32xf32>
    %108 = vector.broadcast %107 : vector<1x32xf32> to vector<8x32xf32>
    %109 = arith.addf %106, %108 : vector<8x32xf32>
    %c0_40 = arith.constant 0 : index
    %c0_41 = arith.constant 0 : index
    %c0_42 = arith.constant 0 : index
    %110 = vector.load %arg8[%c0_40, %c0_41, %c0_42] : memref<1x8x32xf32, #tpu.memory_space<vmem>>, vector<1x8x32xf32>
    %111 = vector.shape_cast %110 : vector<1x8x32xf32> to vector<8x32xf32>
    %112 = vector.shape_cast %109 : vector<8x32xf32> to vector<1x8x32xf32>
    tpu.vector_store %arg8[%c0_40, %c0_41, %c0_42], %112 {strides = array<i32>} : memref<1x8x32xf32, #tpu.memory_space<vmem>>, vector<1x8x32xf32>,
    return
  }
  func.func @transform_0(%arg0: i32) -> (i32, i32, i32) {
    %c0_i32 = arith.constant 0 : i32
    %c0_i32_0 = arith.constant 0 : i32
    %c0_i32_1 = arith.constant 0 : i32
    return %arg0, %c0_i32, %c0_i32_0 : i32, i32, i32
  }
  func.func @transform_1(%arg0: i32) -> (i32, i32) {
    %c0_i32 = arith.constant 0 : i32
    %c0_i32_0 = arith.constant 0 : i32
    %c0_i32_1 = arith.constant 0 : i32
    return %c0_i32, %c0_i32_0 : i32, i32
  }
  func.func @transform_2(%arg0: i32) -> (i32, i32) {
    %c0_i32 = arith.constant 0 : i32
    %c0_i32_0 = arith.constant 0 : i32
    %c0_i32_1 = arith.constant 0 : i32
    return %c0_i32, %c0_i32_0 : i32, i32
  }
  func.func @transform_3(%arg0: i32) -> (i32, i32) {
    %c0_i32 = arith.constant 0 : i32
    %c0_i32_0 = arith.constant 0 : i32
    %c0_i32_1 = arith.constant 0 : i32
    return %c0_i32, %c0_i32_0 : i32, i32
  }
  func.func @transform_4(%arg0: i32) -> (i32, i32) {
    %c0_i32 = arith.constant 0 : i32
    %c0_i32_0 = arith.constant 0 : i32
    %c0_i32_1 = arith.constant 0 : i32
    return %c0_i32, %c0_i32_0 : i32, i32
  }
  func.func @transform_5(%arg0: i32) -> (i32, i32) {
    %c0_i32 = arith.constant 0 : i32
    %c0_i32_0 = arith.constant 0 : i32
    %c0_i32_1 = arith.constant 0 : i32
    return %c0_i32, %c0_i32_0 : i32, i32
  }
  func.func @transform_6(%arg0: i32) -> (i32, i32) {
    %c0_i32 = arith.constant 0 : i32
    %c0_i32_0 = arith.constant 0 : i32
    %c0_i32_1 = arith.constant 0 : i32
    return %c0_i32, %c0_i32_0 : i32, i32
  }
  func.func @transform_7(%arg0: i32) -> (i32, i32, i32) {
    %c0_i32 = arith.constant 0 : i32
    %c0_i32_0 = arith.constant 0 : i32
    %c0_i32_1 = arith.constant 0 : i32
    return %arg0, %c0_i32, %c0_i32_0 : i32, i32, i32
  }
}

</mosaic_0001>

<bundles_post_ra>
// kernel: transformer_encoder_layer.3
= control target key start
LH: loop header
LB: loop body
LE: loop exit
PB: predicated region body
PF: predicated region fallthrough
CT: control target
= control target key end

     0   :  { %vm39_vm0 = vcmask 261120   ;;  %vm131_vm1 = vcmask 523264   ;;  %s465_s1 = inlined_call_operand.vmem [shape: f32[32,64], index: 1, kind: input, shape index: {}]   ;;  %s466_s0 = inlined_call_operand.vmem [shape: f32[16,32], index: 0, kind: input, shape index: {}]   ;;  %s467_s3 = inlined_call_operand.vmem [shape: f32[64,32], index: 3, kind: input, shape index: {}]   ;;  %s468_s2 = inlined_call_operand.vmem [shape: f32[1,64], index: 2, kind: input, shape index: {}]   ;;  %s469_s4 = inlined_call_operand.vmem [shape: f32[1,32], index: 4, kind: input, shape index: {}]   ;;  %s470_s5 = inlined_call_operand.vmem [shape: f32[1,32], index: 5, kind: input, shape index: {}]   ;;  %s471_s6 = inlined_call_operand.vmem [shape: f32[1,32], index: 6, kind: input, shape index: {}]   ;;  %s472_s7 = inlined_call_operand.vmem [shape: f32[16,32], index: 7, kind: output, shape index: {}]  }
   0x1   :  { %v28_v0 = vld [vmem:[%s465_s1] sm:$0xff]  ;;  %v29_v1 = vld [vmem:[%s465_s1 + $0x8] sm:$0xff]  ;;  %v30_v2 = vld [vmem:[%s465_s1 + $0x10] sm:$0xff] }
   0x2   :  { %v329_v3 = vpack.c.bf16 %v29_v1, %v28_v0  ;;  %v31_v4 = vld [vmem:[%s465_s1 + $0x18] sm:$0xff]  ;;  %v26_v5 = vld [vmem:[%s466_s0] sm:$0xff]  ;;  %v124_v8 = vld [vmem:[%s467_s3 + $0x8] sm:$0xff] }
   0x3   :  { %v333_v6 = vpack.c.bf16 %v31_v4, %v30_v2  ;;  %307 = vmatprep.mubr.msk.f32.mxu0 %vm39_vm0, %v26_v5  ;;  %v123_v7 = vld [vmem:[%s467_s3] sm:$0xff]  ;;  %v125_v9 = vld [vmem:[%s467_s3 + $0x10] sm:$0xff]  ;;  %v126_v11 = vld [vmem:[%s467_s3 + $0x18] sm:$0xff] }
   0x4   :  { %330 = vmatprep.subr.bf16.mxu0 %v329_v3  ;;  %v337_v10 = vpack.c.bf16 %v124_v8, %v123_v7  ;;  %v341_v12 = vpack.c.bf16 %v126_v11, %v125_v9  ;;  %v127_v13 = vld [vmem:[%s467_s3 + $0x20] sm:$0xff]  ;;  %v128_v14 = vld [vmem:[%s467_s3 + $0x28] sm:$0xff]  ;;  %v129_v17 = vld [vmem:[%s467_s3 + $0x30] sm:$0xff] }
   0x5   :  { %332 = vmatpush3.bf16.msra.mxu0 %v329_v3  ;;  %v345_v15 = vpack.c.bf16 %v128_v14, %v127_v13  ;;  %v27_v16 = vld [vmem:[%s466_s0 + $0x8] sm:$0xff]  ;;  %v130_v18 = vld [vmem:[%s467_s3 + $0x38] sm:$0xff]  ;;  %v275_v20 = vld [vmem:[%s468_s2] ss:$0 sm:$0xff] }
   0x6   :  { %334 = vmatprep.subr.bf16.mxu0 %v333_v6  ;;  %338 = vmatprep.subr.bf16.mxu1 %v337_v10  ;;  %v349_v19 = vpack.c.bf16 %v130_v18, %v129_v17  ;;  %v280_v29 = vld [vmem:[%s469_s4] ss:$0 sm:$0xff] }
   0x7   :  { %340 = vmatpush3.bf16.msra.mxu1 %v337_v10  ;;  %v281_v53 = vld [vmem:[%s470_s5] ss:$0 sm:$0xff] }
   0x8   :  { %342 = vmatprep.subr.bf16.mxu1 %v341_v12  ;;  %v282_v55 = vld [vmem:[%s471_s6] ss:$0 sm:$0xff] }
   0x9   :  { %336 = vmatpush3.bf16.msra.mxu0 %v333_v6 }
   0xb   :  { %344 = vmatpush3.bf16.msra.mxu1 %v341_v12 }
   0xc   :  { %308 = vmatmul.mubr.msk.f32.vlgmr.msra.gmra.mrb[0].mxu0 %vm39_vm0, %v27_v16  ;;  %346 = vmatprep.subr.bf16.mxu1 %v345_v15 }
   0xf   :  { %348 = vmatpush3.bf16.msra.mxu1 %v345_v15 }
  0x10   :  { %350 = vmatprep.subr.bf16.mxu1 %v349_v19 }
  0x13   :  { %352 = vmatpush3.bf16.msra.mxu1 %v349_v19 }
  0xdf   :  { %v309_v21 = vpop.f32.mrb[0].mxu0 }
  0xe0   :  { %v118_v22 = vadd.f32 %v309_v21, %v275_v20  ;;  %v112_v23 = vpop.f32.mrb[1].mxu0 }
  0xe1   :  { %v113_v24 = vadd.f32 %v275_v20, %v112_v23 }
  0xe2   :  { %v122_v26 = vmax.f32 %v118_v22, 0.0 }
  0xe3   :  { %v121_v25 = vmax.f32 %v113_v24, 0.0 }
  0xe5   :  { %326 = vmatprep.mubr.msk.f32.mxu1 %vm131_vm1, %v121_v25 }
  0xe6   :  { %327 = vmatmul.mubr.msk.f32.vlgmr.msra.gmra.mrb[0].mxu1 %vm131_vm1, %v122_v26 }
 0x1b9   :  { %v328_v27 = vpop.f32.mrb[0].mxu1 }
 0x1ba   :  { %v204_v28 = vpop.f32.mrb[1].mxu1  ;;  %v214_v30 = vadd.f32 %v328_v27, %v27_v16 }
 0x1bb   :  { %v213_v31 = vadd.f32 %v204_v28, %v26_v5 }
 0x1bc   :  { %v223_v34 = vadd.f32 %v280_v29, %v214_v30 }
 0x1bd   :  { %v222_v32 = vadd.f32 %v280_v29, %v213_v31 }
 0x1be   :  { %v227_v35 = vsel %vm39_vm0, %v223_v34, 0.0 }
 0x1bf   :  { %v224_v33 = vsel %vm39_vm0, %v222_v32, 0.0 }
 0x1c0   :  { %225 = vadd.xlane.f32.xlu0 %v224_v33 }
 0x1c4   :  { %228 = vadd.xlane.f32.xlu0 %v227_v35 }
 0x24d   :  { %v226_v36 = vpop.xlane.xlu0 %225 }
 0x24e   :  { %v231_v37 = vmul.f32 0.03125, %v226_v36 }
 0x250   :  { %v233_v38 = vsub.f32 %v222_v32, %v231_v37 }
 0x251   :  { %v229_v39 = vpop.xlane.xlu0 %228 }
 0x252   :  { %v232_v40 = vmul.f32 0.03125, %v229_v39  ;;  %v235_v41 = vmul.f32 %v233_v38, %v233_v38 }
 0x254   :  { %v234_v42 = vsub.f32 %v223_v34, %v232_v40  ;;  %v237_v43 = vsel %vm39_vm0, %v235_v41, 0.0 }
 0x255   :  { %238 = vadd.xlane.f32.xlu1 %v237_v43 }
 0x256   :  { %v236_v44 = vmul.f32 %v234_v42, %v234_v42 }
 0x258   :  { %v240_v45 = vsel %vm39_vm0, %v236_v44, 0.0 }
 0x259   :  { %241 = vadd.xlane.f32.xlu1 %v240_v45 }
 0x2e2   :  { %v239_v46 = vpop.xlane.xlu1 %238 }
 0x2e3   :  { %v243_v47 = vmul.f32 0.03125, %v239_v46 }
 0x2e5   :  { %v245_v48 = vadd.f32 1e-05, %v243_v47 }
 0x2e6   :  { %v242_v49 = vpop.xlane.xlu1 %241 }
 0x2e7   :  { %353 = vrsqrt.f32 %v245_v48  ;;  %v244_v50 = vmul.f32 0.03125, %v242_v49 }
 0x2e9   :  { %v246_v51 = vadd.f32 1e-05, %v244_v50 }
 0x2eb   :  { %355 = vrsqrt.f32 %v246_v51 }
 0x2f1   :  { %v354_v52 = vpop.eup %353 }
 0x2f2   :  { %v249_v54 = vmul.f32 %v354_v52, %v233_v38 }
 0x2f4   :  { %v258_v56 = vmul.f32 %v281_v53, %v249_v54 }
 0x2f5   :  { %v356_v57 = vpop.eup %355 }
 0x2f6   :  { %v267_v58 = vadd.f32 %v282_v55, %v258_v56  ;;  %v250_v59 = vmul.f32 %v356_v57, %v234_v42 }
 0x2f8   :  { %269 = vst.msk [vmem:[%s472_s7] sm:$0xff] %vm39_vm0, %v267_v58  ;;  %v259_v60 = vmul.f32 %v281_v53, %v250_v59 }
 0x2fa   :  { %v268_v61 = vadd.f32 %v282_v55, %v259_v60 }
 0x2fc   :  { %270 = vst.msk [vmem:[%s472_s7 + $0x8] sm:$0xff] %vm39_vm0, %v268_v61 }

// kernel: transformer_encoder_layer.2
= control target key start
LH: loop header
LB: loop body
LE: loop exit
PB: predicated region body
PF: predicated region fallthrough
CT: control target
= control target key end

     0   :  { %12 = vsyncpa [#allocation3], 0  ;;  %s1795_s0 = inlined_call_operand.vmem [shape: f32[2,8,32], index: 0, kind: input, shape index: {}]   ;;  %s1796_s1 = inlined_call_operand.vmem [shape: f32[32,96], index: 1, kind: input, shape index: {}]   ;;  %s1797_s2 = inlined_call_operand.vmem [shape: f32[1,96], index: 2, kind: input, shape index: {}]   ;;  %s1798_s3 = inlined_call_operand.vmem [shape: f32[32,32], index: 3, kind: input, shape index: {}]   ;;  %s1799_s4 = inlined_call_operand.vmem [shape: f32[1,32], index: 4, kind: input, shape index: {}]   ;;  %s1800_s5 = inlined_call_operand.hbm [shape: f32[1,32], index: 5, kind: input, shape index: {}]   ;;  %s1801_s6 = inlined_call_operand.hbm [shape: f32[1,32], index: 6, kind: input, shape index: {}]   ;;  %s1802_s7 = inlined_call_operand.vmem [shape: f32[2,8,32], index: 7, kind: output, shape index: {}]  }
   0x1   :  { %13 = vsyncpa [#allocation5], 0  ;;  %s1585_s24 = smov 0  }
   0x2 LB: > { %s1591_s25 = sadd.s32 4294967295, %s1524_s24   ;;  %p1261_p0 = scmp.ge.s32.totalorder %s1524_s24, 1  ;;  %s1524_s24 = sphi %s1585_s24, %s19_s24  }
   0x3   : > { %p202_p1 = scmp.lt.s32.totalorder %s1524_s24, 3  ;;  %p1803_p2 = scmp.eq.s32.totalorder %s1591_s25, 0 }
   0x4   : > { %s1526_s27 = smov [#allocation2]   ;;  %s1527_s29 = smov [#allocation4]  }
   0x5   : > { %p1596_p3 = pnand %p1261_p0, %p202_p1  ;;  %s227_s28 = sshll.u32 %s1526_s27, 4  ;;  %s228_s28 = int_to_ptr.vmem [resolvable:$true] %s227_s28 }
   0x6   : > { %s238_s30 = sshll.u32 %s1527_s29, 4  ;;  %s1454_s11 = scalar_lea.hbm %s1800_s5, 16  ;;  %s1608_s30 = int_to_ptr.vmem [resolvable:$true] %s238_s30 }
   0x7   : > { %s1805_s26 = scalar_select %p1596_p3, 1, 0 }
   0x8   : > { %p1398_p4 = pneg %p1596_p3  ;;  %p1455_p6 = scmp.ne.s32.totalorder %s1800_s5, %s1454_s11 }
   0x9   : > { %p1461_p10 = scmp.lt.u32.totalorder %s1454_s11, %s1800_s5 }
   0xa   : > { %p1604_p5 = pnand %p1803_p2, %p1398_p4 }
   0xc   : > { %p1456_p7 = pneg %p1604_p5 }
   0xe   : > { %p1457_p8 = pnand %p1456_p7, %p1455_p6 }
  0x10   : > { %p1458_p9 = pneg %p1457_p8 }
  0x12   : > { %p1463_p11 = pnand %p1461_p10, %p1458_p9 }
  0x14   : > { %1466 = shalt.err (!%p1463_p11)
}
  0x15   : > { %s1467_s16 = scalar_lea.vmem %s228_s28, 16  ;;  %s1474_s17 = scalar_lea.vmem %s228_s28, 32 }
  0x16   : > { %p1468_p12 = scmp.ne.s32.totalorder %s228_s28, %s1467_s16  ;;  %p1475_p1 = scmp.lt.s32.totalorder %s228_s28, %s228_s28 }
  0x17   : > { %p1476_p4 = scmp.lt.s32.totalorder %s1474_s17, %s1467_s16 }
  0x18   : > { %p1470_p13 = pnand %p1468_p12, %p1456_p7 }
  0x19   : > { %p1477_p2 = por %p1476_p4, %p1475_p1 }
  0x1a   : > { %p1471_p0 = pneg %p1470_p13 }
  0x1c   : > { %p1478_p3 = pnand %p1477_p2, %p1471_p0 }
  0x1e   : > { %1481 = shalt.err (!%p1478_p3)
}
  0x1f   : > { %1401 = dma.hbm_to_vmem [thread:$0]  (!%p1604_p5), %s1800_s5, 16, %s228_s28, [#allocation3]  }
  0x20   : > { %s1482_s22 = scalar_lea.hbm %s1801_s6, 16 }
  0x21   : > { %p1483_p6 = scmp.ne.s32.totalorder %s1801_s6, %s1482_s22  ;;  %p1489_p3 = scmp.lt.u32.totalorder %s1482_s22, %s1801_s6 }
  0x23   : > { %p1485_p8 = pnand %p1483_p6, %p1456_p7 }
  0x25   : > { %p1486_p2 = pneg %p1485_p8 }
  0x27   : > { %p1491_p9 = pnand %p1489_p3, %p1486_p2 }
  0x29   : > { %1494 = shalt.err (!%p1491_p9)
}
  0x2a   : > { %s1495_s28 = scalar_lea.vmem %s1608_s30, 16  ;;  %s1502_s10 = scalar_lea.vmem %s1608_s30, 32 }
  0x2b   : > { %p1496_p10 = scmp.ne.s32.totalorder %s1608_s30, %s1495_s28  ;;  %p1503_p13 = scmp.lt.s32.totalorder %s1608_s30, %s1608_s30 }
  0x2c   : > { %p1504_p0 = scmp.lt.s32.totalorder %s1502_s10, %s1495_s28 }
  0x2d   : > { %p1498_p11 = pnand %p1496_p10, %p1456_p7 }
  0x2e   : > { %p1505_p1 = por %p1504_p0, %p1503_p13 }
  0x2f   : > { %p1499_p12 = pneg %p1498_p11 }
  0x31   : > { %p1506_p4 = pnand %p1505_p1, %p1499_p12 }
  0x33   : > { %1509 = shalt.err (!%p1506_p4)
}
  0x34   : > { %1404 = dma.hbm_to_vmem [thread:$0]  (!%p1604_p5), %s1801_s6, 16, %s1608_s30, [#allocation5]  }
  0x35   : > { %p1807_p6 = scmp.ne.s32.totalorder %s1805_s26, 0 }
  0x36   : > { %p1808_p7 = scmp.eq.s32.totalorder (!%p1807_p6), %s1591_s25, 0 }
  0x37   : > { %258 = sbr.rel (%p1807_p6) target bundleno = 2374 (0x946), region = 48 }
  0x3e   : > { %1515 = dma.done.wait (%p1808_p7), [#allocation3], 16   ;;  %p1809_p8 = pmov %p1808_p7 }
  0x3f   : > { %p1810_p2 = pmov %p1808_p7 }
  0x40   : > { %1517 = vsyncadd (%p1809_p8), [#allocation3], 4294967280 }
  0x41   : > { %1519 = dma.done.wait (%p1810_p2), [#allocation5], 16   ;;  %p1811_p3 = pmov %p1810_p2 }
  0x42   : > { %p292_p9 = scmp.lt.s32.totalorder %s1591_s25, 1  ;;  %v1528_v0 = vmov 0.0|0.0   ;;  %vm1529_vm0 = vmmov 0   ;;  %v1530_v1 = vmov 0.0   ;;  %v301_v2 = vld [vmem:[%s1796_s1] sm:$0xff]  ;;  %v302_v3 = vld [vmem:[%s1796_s1 + $0x8] sm:$0xff] }
  0x43   : > { %1521 = vsyncadd (%p1811_p3), [#allocation5], 4294967280  ;;  %1378 = vmatprep.subr.bf16.mxu0 %v1528_v0  ;;  %1324 = vmatprep.mubr.msk.f32.mxu0 %vm1529_vm0, %v1530_v1  ;;  %v303_v4 = vld [vmem:[%s1796_s1 + $0x10] sm:$0xff]  ;;  %v1379_v5 = vpack.c.bf16 %v302_v3, %v301_v2  ;;  %v304_v6 = vld [vmem:[%s1796_s1 + $0x18] sm:$0xff]  ;;  %vm312_vm1 = vcmask 261120   ;;  %s1531_s27 = smov 64  }
  0x44   : > { %1327 = vmatprep.subr.mxu1 %v1530_v1  ;;  %1329 = vmatprep.mubr.msk.f32.mxu1 %vm1529_vm0, %v1530_v1  ;;  %s1813_s25 = smov (!%p292_p9, %s1591_s25), 1  ;;  %v1382_v7 = vpack.c.bf16 %v304_v6, %v303_v4  ;;  %v1270_v9 = vld [vmem:[%s1797_s2] ss:$0 sm:$0xff]  ;;  %s1532_s29 = smov 96   ;;  %vm389_vm2 = vcmask 64512   ;;  %vm1063_vm3 = vcmask 130048  }
  0x45   : > { %s1268_s18 = sshll.u32 %s1813_s25, 3  ;;  %1380 = vmatpush3.bf16.msra.mxu0 %v1379_v5  ;;  %s1533_s9 = smov 88   ;;  %vm1065_vm4 = vcmask 195584  }
  0x46   : > { %1381 = vmatprep.subr.bf16.mxu0 %v1528_v0  ;;  %s295_s21 = scalar_lea.vmem %s1795_s0, %s1268_s18  ;;  %s1534_s28 = smov 120  }
  0x47   : > { %v1697_v8 = vld [vmem:[%s295_s21] sm:$0xff]  ;;  %s1535_s10 = smov 80   ;;  %s1536_s11 = smov 72  }
  0x48   : > { %s1537_s12 = smov 112   ;;  %s1538_s26 = smov 104  }
  0x49   : > { %1383 = vmatpush3.bf16.msra.mxu0 %v1382_v7  ;;  %s1539_s30 = smov 56   ;;  %s1540_s8 = smov 48  }
  0x4a   : > { %1347 = vmatprep.subr.mxu0 %v1530_v1  ;;  %s1541_s13 = smov 40   ;;  %s1542_s23 = smov 8  }
  0x4c   : > { %1325 = vmatmul.mubr.msk.f32.vlgmr.msra.gmra.mrb[0].mxu0 %vm312_vm1, %v1697_v8 }
  0x4d   : > { %1349 = vmatprep.mubr.msk.f32.mxu0 %vm1529_vm0, %v1530_v1 }
 0x11f   : > { %v382_v10 = vpop.f32.mrb[0].mxu0 }
 0x120   : > { %v1707_v11 = vadd.f32 %v1270_v9, %v382_v10  ;;  %v1326_v12 = vpop.f32.mrb[1].mxu0 }
 0x122   : > { %476 = vrot.lane.b32.xlu1 %v1707_v11, %s1531_s27  ;;  %387 = vrot.lane.b32.xlu0 %v1707_v11, %s1532_s29  ;;  %s1543_s27 = smov 16   ;;  %s1544_s29 = smov 24  }
 0x126   : > { %554 = vrot.lane.b32.xlu1 %v1707_v11, %s1533_s9 }
 0x12a   : > { %552 = vrot.lane.b32.xlu1 %v1707_v11, %s1534_s28 }
 0x12e   : > { %720 = vrot.lane.b32.xlu1 %v1707_v11, %s1535_s10 }
 0x194   : > { %v477_v13 = vpop.permute.xlu1 %476  ;;  %v388_v14 = vpop.permute.xlu0 %387 }
 0x195   : > { %1328 = vmatpush3.xpose.msk.msra.mxu1 %vm389_vm2, %v388_v14  ;;  %v1068_v14 = vld [vmem:[%s1798_s3 + $0x8] sm:$0xff] }
 0x196   : > { %1332 = vmatprep.subr.mxu1 %v1530_v1 }
 0x198   : > { %v555_v15 = vpop.permute.xlu1 %554  ;;  %1330 = vmatmul.mubr.msk.f32.vlgmr.msra.gmra.mrb[0].mxu1 %vm389_vm2, %v1707_v11 }
 0x199   : > { %1333 = vmatpush3.msra.mxu1 %v477_v13  ;;  %1334 = vmatprep.mubr.msk.f32.mxu1 %vm1529_vm0, %v1530_v1  ;;  %v1067_v13 = vld [vmem:[%s1798_s3] sm:$0xff] }
 0x19a   : > { %1337 = vmatprep.subr.mxu1 %v1530_v1 }
 0x19c   : > { %v553_v16 = vpop.permute.xlu1 %552 }
 0x1a0   : > { %v721_v17 = vpop.permute.xlu1 %720 }
 0x1a1   : > { %1348 = vmatpush3.xpose.msk.msra.mxu0 %vm389_vm2, %v721_v17 }
 0x1a2   : > { %1357 = vmatprep.subr.mxu0 %v1530_v1 }
 0x26b   : > { %v460_v18 = vpop.f32.mrb[0].mxu1 }
 0x26c   : > { %v464_v19 = vmul.f32 0.35355338, %v460_v18  ;;  %v1331_v20 = vpop.f32.mrb[1].mxu1 }
 0x26e   : > { %v465_v21 = vsel %vm389_vm2, %v464_v19, -inf }
 0x26f   : > { %466 = vmax.xlane.f32.xlu0 %v465_v21 }
 0x285   : > { %886 = vrot.lane.b32.xlu0 %v1707_v11, %s1536_s11 }
 0x2fc   : > { %v467_v22 = vpop.xlane.xlu0 %466 }
 0x2fd   : > { %v468_v23 = vsub.f32 %v464_v19, %v467_v22 }
 0x2ff   : > { %v469_v24 = vmul.f32 1.442695, %v468_v23 }
 0x300   : > { %v887_v29 = vpop.permute.xlu0 %886 }
 0x301   : > { %1436 = vpow2.f32 %v469_v24 }
 0x30b   : > { %v1437_v25 = vpop.eup %1436 }
 0x30c   : > { %v471_v26 = vsel %vm389_vm2, %v1437_v25, 0.0 }
 0x30d   : > { %472 = vadd.xlane.f32.xlu1 %v471_v26 }
 0x31e   : > { %718 = vrot.lane.b32.xlu1 %v1707_v11, %s1537_s12  ;;  %s299_s12 = scalar_lea.vmem %s1802_s7, %s1268_s18 }
 0x322   : > { %884 = vrot.lane.b32.xlu1 %v1707_v11, %s1538_s26 }
 0x39a   : > { %v473_v27 = vpop.xlane.xlu1 %472 }
 0x39b   : > { %1438 = vrcp.f32 %v473_v27 }
 0x39e   : > { %v719_v28 = vpop.permute.xlu1 %718 }
 0x39f   : > { %1350 = vmatmul.mubr.msk.f32.vlgmr.msra.gmra.mrb[2].mxu0 %vm389_vm2, %v719_v28 }
 0x3a0   : > { %1358 = vmatpush3.xpose.msk.msra.mxu0 %vm389_vm2, %v887_v29  ;;  %1359 = vmatprep.mubr.msk.f32.mxu0 %vm1529_vm0, %v1530_v1 }
 0x3a1   : > { %1384 = vmatprep.subr.bf16.mxu0 %v1528_v0 }
 0x3a2   : > { %v885_v30 = vpop.permute.xlu1 %884 }
 0x3a3   : > { %1360 = vmatmul.mubr.msk.f32.vlgmr.msra.gmra.mrb[4].mxu0 %vm389_vm2, %v885_v30  ;;  %v1285_v30 = vld [vmem:[%s1799_s4] ss:$0 sm:$0xff] }
 0x3a4   : > { %1375 = vmatprep.mubr.msk.f32.mxu0 %vm1529_vm0, %v1530_v1 }
 0x3a5   : > { %v1439_v31 = vpop.eup %1438 }
 0x3a6   : > { %v475_v32 = vmul.f32 %v1439_v31, %v1437_v25 }
 0x3a8   : > { %1335 = vmatmul.mubr.msk.f32.vlgmr.msra.gmra.mrb[2].mxu1 %vm389_vm2, %v475_v32 }
 0x3a9   : > { %1338 = vmatpush3.xpose.msk.msra.mxu1 %vm389_vm2, %v555_v15  ;;  %1339 = vmatprep.mubr.msk.f32.mxu1 %vm1529_vm0, %v1530_v1  ;;  %v1385_v15 = vpack.c.bf16 %v1068_v14, %v1067_v13 }
 0x3aa   : > { %1342 = vmatprep.subr.mxu1 %v1530_v1 }
 0x3ab   : > { %1386 = vmatpush3.bf16.msra.mxu0 %v1385_v15 }
 0x3ac   : > { %1340 = vmatmul.mubr.msk.f32.vlgmr.msra.gmra.mrb[4].mxu1 %vm389_vm2, %v553_v16  ;;  %1387 = vmatprep.subr.bf16.mxu0 %v1528_v0  ;;  %v1069_v16 = vld [vmem:[%s1798_s3 + $0x10] sm:$0xff] }
 0x3ad   : > { %1344 = vmatprep.mubr.msk.f32.mxu1 %vm1529_vm0, %v1530_v1 }
 0x472   : > { %v792_v33 = vpop.f32.mrb[2].mxu0 }
 0x473   : > { %v796_v34 = vmul.f32 0.35355338, %v792_v33  ;;  %v1351_v35 = vpop.f32.mrb[3].mxu0 }
 0x475   : > { %v797_v36 = vsel %vm389_vm2, %v796_v34, -inf }
 0x476   : > { %798 = vmax.xlane.f32.xlu0 %v797_v36  ;;  %v958_v37 = vpop.f32.mrb[4].mxu0 }
 0x477   : > { %v1361_v38 = vpop.f32.mrb[5].mxu0  ;;  %v962_v44 = vmul.f32 0.35355338, %v958_v37 }
 0x479   : > { %v963_v46 = vsel %vm389_vm2, %v962_v44, -inf }
 0x47b   : > { %v1745_v39 = vpop.f32.mrb[2].mxu1 }
 0x47c   : > { %v1336_v40 = vpop.f32.mrb[3].mxu1 }
 0x47f   : > { %v626_v41 = vpop.f32.mrb[4].mxu1 }
 0x480   : > { %v630_v42 = vmul.f32 0.35355338, %v626_v41  ;;  %v1341_v43 = vpop.f32.mrb[5].mxu1 }
 0x482   : > { %v631_v45 = vsel %vm389_vm2, %v630_v42, -inf }
 0x483   : > { %632 = vmax.xlane.f32.xlu1 %v631_v45  ;;  %v1287_v45 = vld [vmem:[#allocation4] ss:$0 sm:$0xff] }
 0x487   : > { %964 = vmax.xlane.f32.xlu1 %v963_v46 }
 0x503   : > { %v799_v47 = vpop.xlane.xlu0 %798 }
 0x504   : > { %v800_v48 = vsub.f32 %v796_v34, %v799_v47 }
 0x506   : > { %v801_v49 = vmul.f32 1.442695, %v800_v48 }
 0x508   : > { %1440 = vpow2.f32 %v801_v49 }
 0x510   : > { %v633_v50 = vpop.xlane.xlu1 %632 }
 0x511   : > { %v634_v58 = vsub.f32 %v630_v42, %v633_v50 }
 0x512   : > { %v1441_v51 = vpop.eup %1440 }
 0x513   : > { %v803_v52 = vsel %vm389_vm2, %v1441_v51, 0.0  ;;  %v635_v59 = vmul.f32 1.442695, %v634_v58 }
 0x514   : > { %804 = vadd.xlane.f32.xlu1 %v803_v52  ;;  %v965_v53 = vpop.xlane.xlu1 %964 }
 0x515   : > { %v966_v54 = vsub.f32 %v962_v44, %v965_v53  ;;  %v1286_v44 = vld [vmem:[#allocation2] ss:$0 sm:$0xff] }
 0x517   : > { %v967_v55 = vmul.f32 1.442695, %v966_v54 }
 0x519   : > { %1442 = vpow2.f32 %v967_v55 }
 0x51a   : > { %1444 = vpow2.f32 %v635_v59 }
 0x523   : > { %v1443_v56 = vpop.eup %1442 }
 0x524   : > { %v969_v57 = vsel %vm389_vm2, %v1443_v56, 0.0  ;;  %v1445_v60 = vpop.eup %1444 }
 0x525   : > { %642 = vrot.lane.b32.xlu1 %v1707_v11, %s1539_s30  ;;  %970 = vadd.xlane.f32.xlu0 %v969_v57  ;;  %v637_v61 = vsel %vm389_vm2, %v1445_v60, 0.0 }
 0x53b   : > { %808 = vrot.lane.b32.xlu0 %v1707_v11, %s1540_s8 }
 0x549   : > { %638 = vadd.xlane.f32.xlu1 %v637_v61 }
 0x55a   : > { %974 = vrot.lane.b32.xlu1 %v1707_v11, %s1541_s13 }
 0x5a1   : > { %v805_v62 = vpop.xlane.xlu1 %804 }
 0x5a5   : > { %v643_v63 = vpop.permute.xlu1 %642 }
 0x5a6   : > { %1343 = vmatpush3.msra.mxu1 %v643_v63 }
 0x5a7   : > { %1352 = vmatprep.subr.mxu1 %v1530_v1 }
 0x5b2   : > { %v971_v3 = vpop.xlane.xlu0 %970 }
 0x5b6   : > { %v809_v7 = vpop.permute.xlu0 %808 }
 0x5d6   : > { %v639_v2 = vpop.xlane.xlu1 %638 }
 0x5d7   : > { %1446 = vrcp.f32 %v639_v2 }
 0x5d8   : > { %1448 = vrcp.f32 %v805_v62 }
 0x5d9   : > { %1450 = vrcp.f32 %v971_v3 }
 0x5da   : > { %v975_v11 = vpop.permute.xlu1 %974 }
 0x5e1   : > { %v1447_v4 = vpop.eup %1446 }
 0x5e2   : > { %v641_v5 = vmul.f32 %v1447_v4, %v1445_v60  ;;  %v1449_v6 = vpop.eup %1448 }
 0x5e3   : > { %v807_v9 = vmul.f32 %v1449_v6, %v1441_v51  ;;  %v1451_v10 = vpop.eup %1450 }
 0x5e4   : > { %1345 = vmatmul.mubr.msk.f32.vlgmr.msra.gmra.mrb[6].mxu1 %vm389_vm2, %v641_v5  ;;  %v973_v12 = vmul.f32 %v1451_v10, %v1443_v56 }
 0x5e5   : > { %1353 = vmatpush3.msra.mxu1 %v809_v7  ;;  %1354 = vmatprep.mubr.msk.f32.mxu1 %vm1529_vm0, %v1530_v1 }
 0x5e6   : > { %1362 = vmatprep.subr.mxu1 %v1530_v1 }
 0x5e8   : > { %1355 = vmatmul.mubr.msk.f32.vlgmr.msra.gmra.mrb[8].mxu1 %vm389_vm2, %v807_v9 }
 0x5e9   : > { %1363 = vmatpush3.msra.mxu1 %v975_v11  ;;  %1364 = vmatprep.mubr.msk.f32.mxu1 %vm1529_vm0, %v1530_v1  ;;  %v1070_v1 = vld [vmem:[%s1798_s3 + $0x18] sm:$0xff] }
 0x5ea   : > { %v1388_v17 = vpack.c.bf16 %v1070_v1, %v1069_v16 }
 0x5ec   : > { %1365 = vmatmul.mubr.msk.f32.vlgmr.msra.gmra.mrb[10].mxu1 %vm389_vm2, %v973_v12  ;;  %1389 = vmatpush3.bf16.msra.mxu0 %v1388_v17 }
 0x6b7   : > { %v714_v18 = vpop.f32.mrb[6].mxu1 }
 0x6b8   : > { %1051 = vrot.lane.b32.xlu1 %v714_v18, %s1542_s23  ;;  %v1346_v19 = vpop.f32.mrb[7].mxu1 }
 0x6bb   : > { %v880_v20 = vpop.f32.mrb[8].mxu1 }
 0x6bc   : > { %1055 = vrot.lane.b32.xlu0 %v880_v20, %s1543_s27  ;;  %v1356_v21 = vpop.f32.mrb[9].mxu1 }
 0x6bf   : > { %v1046_v22 = vpop.f32.mrb[10].mxu1 }
 0x6c0   : > { %1059 = vrot.lane.b32.xlu1 %v1046_v22, %s1544_s29  ;;  %v1366_v0 = vpop.f32.mrb[11].mxu1 }
 0x72a   : > { %v1052_v23 = vpop.permute.xlu1 %1051 }
 0x72b   : > { %v1062_v25 = vsel %vm389_vm2, %v1745_v39, %v1052_v23 }
 0x72e   : > { %v1056_v24 = vpop.permute.xlu0 %1055 }
 0x72f   : > { %v1064_v26 = vsel %vm1063_vm3, %v1062_v25, %v1056_v24 }
 0x732   : > { %v1060_v27 = vpop.permute.xlu1 %1059 }
 0x733   : > { %v1066_v28 = vsel %vm1065_vm4, %v1064_v26, %v1060_v27 }
 0x734   : > { %1376 = vmatmul.mubr.msk.f32.vlgmr.msra.gmra.mrb[6].mxu0 %vm312_vm1, %v1066_v28 }
 0x807   : > { %v1140_v29 = vpop.f32.mrb[6].mxu0 }
 0x808   : > { %v1144_v31 = vadd.f32 %v1140_v29, %v1697_v8  ;;  %v1377_v32 = vpop.f32.mrb[7].mxu0 }
 0x80a   : > { %v1152_v33 = vadd.f32 %v1285_v30, %v1144_v31 }
 0x80c   : > { %v1153_v34 = vsel %vm312_vm1, %v1152_v33, 0.0 }
 0x80d   : > { %1154 = vadd.xlane.f32.xlu0 %v1153_v34 }
 0x89a   : > { %v1155_v35 = vpop.xlane.xlu0 %1154 }
 0x89b   : > { %v1157_v36 = vmul.f32 0.03125, %v1155_v35 }
 0x89d   : > { %v1158_v37 = vsub.f32 %v1152_v33, %v1157_v36 }
 0x89f   : > { %v1159_v38 = vmul.f32 %v1158_v37, %v1158_v37 }
 0x8a1   : > { %v1160_v39 = vsel %vm312_vm1, %v1159_v38, 0.0 }
 0x8a2   : > { %1161 = vadd.xlane.f32.xlu1 %v1160_v39 }
 0x92f   : > { %v1162_v40 = vpop.xlane.xlu1 %1161 }
 0x930   : > { %v1163_v41 = vmul.f32 0.03125, %v1162_v40 }
 0x932   : > { %v1164_v42 = vadd.f32 1e-05, %v1163_v41 }
 0x934   : > { %1452 = vrsqrt.f32 %v1164_v42 }
 0x93e   : > { %v1453_v43 = vpop.eup %1452 }
 0x93f   : > { %v1166_v8 = vmul.f32 %v1453_v43, %v1158_v37 }
 0x941   : > { %v1174_v46 = vmul.f32 %v1286_v44, %v1166_v8 }
 0x943   : > { %v1182_v47 = vadd.f32 %v1287_v45, %v1174_v46 }
 0x945   : > { %1183 = vst.msk [vmem:[%s299_s12] sm:$0xff] %vm312_vm1, %v1182_v47 }
 0x946 PF: > { %s19_s24 = sadd.s32 1, %s1524_s24  }
 0x947   : > { %p16_p5 = scmp.ge.s32.totalorder %s19_s24, 4  }
 0x949   :  { %18 = sbr.rel (!%p16_p5) target bundleno = 2 (0x2), region = 87 }
 0x950   :  { %1203 = vsyncpa [#allocation3], 1 }
 0x951   :  { %1205 = vsyncpa [#allocation3 + $0x1], 1 }
 0x952   :  { %1206 = vsyncpa [#allocation5], 1 }

</bundles_post_ra>
